<compile_context>
chip_gen: v6e
topology: v6e:2x2x1
jax: 0.10.0
libtpu: 0.0.40
codegen_flags: <defaults>
</compile_context>

<pallas_src>
import jax
import jax.numpy as jnp
from jax.experimental import pallas as pl
from jax.experimental.pallas import tpu as pltpu


# ----------------------------------------------------------------------------
# Primary (recommended) path: forward() == identity on the parameter.
# Differentiable, zero launch overhead. Use this everywhere in the hot path.
# ----------------------------------------------------------------------------
def policy_forward(actor: jax.Array) -> jax.Array:
    """JAX equivalent of policy.forward(): mu = self.actor (pure passthrough)."""
    return actor


# ----------------------------------------------------------------------------
# Optional kernel shell (only if a pallas_call is mandated by the framework).
# Gridless, SMEM scalar path; no I/O alias (avoids a possible hidden XLA copy
# of the long-lived parameter); identity custom_vjp so jax.grad works through
# it even though pallas_call has no automatic VJP.
# ----------------------------------------------------------------------------
def _policy_forward_kernel(actor_ref, mu_ref):
    # forward(): mu = self.actor  (scalar passthrough; refs live in SMEM)
    mu_ref[0] = actor_ref[0]


def _policy_forward_pallas_raw(actor: jax.Array) -> jax.Array:
    return pl.pallas_call(
        _policy_forward_kernel,
        out_shape=jax.ShapeDtypeStruct(actor.shape, actor.dtype),
        in_specs=[pl.BlockSpec(memory_space=pltpu.MemorySpace.SMEM)],
        out_specs=pl.BlockSpec(memory_space=pltpu.MemorySpace.SMEM),
    )(actor)


@jax.custom_vjp
def policy_forward_pallas(actor: jax.Array) -> jax.Array:
    """Kernel-shell variant of policy.forward() (framework parity only)."""
    return _policy_forward_pallas_raw(actor)


def _policy_fwd(actor):
    return _policy_forward_pallas_raw(actor), None


def _policy_bwd(_, g):
    # forward is the identity on the parameter -> gradient passes through.
    return (g,)


policy_forward_pallas.defvjp(_policy_fwd, _policy_bwd)


def init_policy_params() -> jax.Array:
    # Deterministic init, matching torch.ones(1) * 1
    return jnp.ones((1,), dtype=jnp.float32)


if __name__ == "__main__":
    # PRNGKey(0) per instructions (the init itself is deterministic ones).
    _ = jax.random.PRNGKey(0)
    actor = init_policy_params()

    # Hot path: direct passthrough (the real answer).
    mu = policy_forward(actor)
    jax.block_until_ready(mu)
    assert mu.shape == (1,)
    assert mu.dtype == jnp.float32
    assert bool(jnp.allclose(mu, jnp.ones((1,), jnp.float32)))

    # Kernel-shell path: gridless SMEM scalar passthrough (no I/O alias).
    mu_k = policy_forward_pallas(actor)
    jax.block_until_ready(mu_k)
    assert mu_k.shape == (1,)
    assert mu_k.dtype == jnp.float32
    assert bool(jnp.allclose(mu_k, jnp.ones((1,), jnp.float32)))

    # Differentiability check: gradient of sum(mu) w.r.t. actor is ones.
    g = jax.grad(lambda a: jnp.sum(policy_forward_pallas(a)))(actor)
    jax.block_until_ready(g)
    assert bool(jnp.allclose(g, jnp.ones((1,), jnp.float32)))

    print("KERNEL_OK")
</pallas_src>

<mosaic_0001>
module attributes {stable_mosaic.version = 11 : i64} {
  func.func @_policy_forward_kernel(%arg0: memref<1xf32, #tpu.memory_space<smem>>, %arg1: memref<1xf32, #tpu.memory_space<smem>>) attributes {dimension_semantics = [], scalar_prefetch = 0 : i64, scratch_operands = 0 : i64, tpu.core_type = #tpu.core_type<tc>} {
    %c0 = arith.constant 0 : index
    %0 = memref.load %arg0[%c0] : memref<1xf32, #tpu.memory_space<smem>>
    %c0_0 = arith.constant 0 : index
    %1 = memref.load %arg1[%c0_0] : memref<1xf32, #tpu.memory_space<smem>>
    memref.store %0, %arg1[%c0_0] : memref<1xf32, #tpu.memory_space<smem>>
    return
  }
}

</mosaic_0001>

<bundles_post_ra>
// kernel: tpu_custom_call.1
= control target key start
LH: loop header
LB: loop body
LE: loop exit
PB: predicated region body
PF: predicated region fallthrough
CT: control target
= control target key end

     0   :  { %7 = vsyncpa [#allocation4], 0  ;;  %s37_s8 = smov [#allocation3]   ;;  %s54_s0 = inlined_call_operand.<no memory space> [shape: f32[1], index: 0, kind: input, shape index: {}]   ;;  %s55_s1 = inlined_call_operand.hbm [shape: f32[1], index: 1, kind: output, shape index: {}]  }
   0x1   :  { %12 = sst [smem:[#allocation3]] %s54_s0 }
   0x2   :  { %20 = dma.smem_to_hbm %s37_s8, 16, %s55_s1, [#allocation4]  }
   0x3   :  { %35 = dma.done.wait [#allocation4], 16  }
   0x4   :  { %36 = vsyncadd [#allocation4], 4294967280 }
   0x5   :  { %24 = sfence }
   0x6   :  { %25 = vsyncpa [#allocation4], 1 }

</bundles_post_ra>
